<compile_context>
chip_gen: v5e
topology: v5e:2x2
jax: 0.10.0
libtpu: 0.0.40
codegen_flags: <defaults>
</compile_context>

<pallas_src>
import functools

import jax
import jax.numpy as jnp
from jax.experimental import pallas as pl
from jax.experimental.pallas import tpu as pltpu


# ---------------------------------------------------------------------------
# Kernels: one (tm, tn) output tile per grid step, full-K contraction.
# ---------------------------------------------------------------------------
def _decode_bias_kernel(x_ref, w_ref, b_ref, o_ref):
    # x_ref: [tm, K] activations (native dtype), w_ref: [K, tn] bf16 weight.T,
    # b_ref: [1, tn] f32 bias, o_ref: [tm, tn] output.
    x = x_ref[...].astype(w_ref.dtype)
    acc = jnp.dot(x, w_ref[...], preferred_element_type=jnp.float32)
    o_ref[...] = (acc + b_ref[...]).astype(o_ref.dtype)


def _decode_kernel(x_ref, w_ref, o_ref):
    x = x_ref[...].astype(w_ref.dtype)
    acc = jnp.dot(x, w_ref[...], preferred_element_type=jnp.float32)
    o_ref[...] = acc.astype(o_ref.dtype)


# ---------------------------------------------------------------------------
# Tile selection helpers
# ---------------------------------------------------------------------------
_VMEM_BUDGET = 40 * 1024 * 1024      # working-set target; < 48 MiB limit (v7x safe)
_VMEM_LIMIT = 48 * 1024 * 1024


def _pick_tile(dim, tmax, granule):
    """Block size for one dimension.

    If the whole dim fits in one block, use the full dim (legal regardless of
    alignment).  Otherwise search multiples of `granule` in [tmax//2, tmax] and
    pick the one minimising dead edge work (ties -> larger tile).
    """
    if dim <= tmax:
        return dim
    best_t, best_waste = granule, None
    t = (tmax // granule) * granule
    lo = max(granule, (tmax // 2 // granule) * granule)
    while t >= lo:
        waste = (-(-dim // t)) * t - dim
        if best_waste is None or waste < best_waste:
            best_t, best_waste = t, waste
            if waste == 0:
                break
        t -= granule
    return best_t


# ---------------------------------------------------------------------------
# Wrapper
# ---------------------------------------------------------------------------
@functools.partial(jax.jit, static_argnames=("out_dtype", "tm_max", "tn_max"))
def linear_decode(
    x_flat,           # [M, K] activations (any float dtype; cast in-kernel)
    w_t,              # [K, N] pre-transposed, pre-cast (bf16) weight
    bias2d=None,      # [1, N] f32 bias, or None for bias=False
    *,
    out_dtype=jnp.float32,   # bf16 also supported to halve logit writeback
    tm_max=512,
    tn_max=1024,
):
    M, K = x_flat.shape
    Kw, N = w_t.shape
    assert K == Kw, (K, Kw)

    tm = _pick_tile(M, tm_max, 8)
    tn = _pick_tile(N, tn_max, 128)

    x_bytes = jnp.dtype(x_flat.dtype).itemsize
    w_bytes = jnp.dtype(w_t.dtype).itemsize
    o_bytes = jnp.dtype(out_dtype).itemsize

    def footprint(tm_, tn_):  # double-buffered working set
        return 2 * (tm_ * K * x_bytes + K * tn_ * w_bytes + tm_ * tn_ * o_bytes + tn_ * 4)

    # Shrink tiles if an unusually large hidden size would blow the VMEM budget.
    while footprint(tm, tn) > _VMEM_BUDGET and (tn > 128 or tm > 8):
        if tn > 128:
            tn = max(128, (tn // 2) // 128 * 128)
        elif tm > 8:
            tm = max(8, (tm // 2) // 8 * 8)
    # TODO(synk): if K alone ever exceeds the VMEM budget a K-split grid with an
    # f32 accumulator would be needed; decoder hidden sizes never hit this.

    grid = (pl.cdiv(M, tm), pl.cdiv(N, tn))

    x_spec = pl.BlockSpec((tm, K), lambda i, j: (i, 0))     # constant over j -> no re-DMA
    w_spec = pl.BlockSpec((K, tn), lambda i, j: (0, j))
    o_spec = pl.BlockSpec((tm, tn), lambda i, j: (i, j))

    out_shape = jax.ShapeDtypeStruct((M, N), out_dtype)
    compiler_params = pltpu.CompilerParams(
        dimension_semantics=("parallel", "parallel"),
        vmem_limit_bytes=_VMEM_LIMIT,
    )

    if bias2d is not None:
        b_spec = pl.BlockSpec((1, tn), lambda i, j: (0, j))
        return pl.pallas_call(
            _decode_bias_kernel,
            out_shape=out_shape,
            grid=grid,
            in_specs=[x_spec, w_spec, b_spec],
            out_specs=o_spec,
            compiler_params=compiler_params,
        )(x_flat, w_t, bias2d)

    return pl.pallas_call(
        _decode_kernel,
        out_shape=out_shape,
        grid=grid,
        in_specs=[x_spec, w_spec],
        out_specs=o_spec,
        compiler_params=compiler_params,
    )(x_flat, w_t)


# ---------------------------------------------------------------------------
# Module port
# ---------------------------------------------------------------------------
class LinearDecoderPallas:
    """JAX/Pallas port of LinearDecoder (eval mode)."""

    def __init__(self, n_out, n_hid, output_p, tie_encoder=None, bias=True,
                 key=None, compute_dtype=jnp.bfloat16, out_dtype=jnp.float32):
        if key is None:
            key = jax.random.PRNGKey(0)
        # TODO(synk): ActivationDropout(output_p) is identity in eval mode; no
        # train-mode dropout is implemented here.
        self.output_p = output_p
        self.out_dtype = out_dtype

        if tie_encoder is not None:
            weight = getattr(tie_encoder, "weight", tie_encoder)
            weight = jnp.asarray(weight, dtype=jnp.float32)
            assert weight.shape == (n_out, n_hid)
        else:
            # kaiming_uniform_ (a=0, fan_in=n_hid): bound = sqrt(6 / fan_in)
            bound = (6.0 / n_hid) ** 0.5
            weight = jax.random.uniform(
                key, (n_out, n_hid), minval=-bound, maxval=bound, dtype=jnp.float32
            )
        self.weight = weight                                   # [n_out, n_hid] f32
        # Hoisted out of the hot path: transpose + cast the weight once at init.
        self.weight_t = weight.T.astype(compute_dtype)         # [n_hid, n_out] bf16
        # PyTorch zeroes the bias at init; bias=False -> no bias operand at all.
        self.bias2d = jnp.zeros((1, n_out), jnp.float32) if bias else None

    def __call__(self, inputs):
        raw_outputs, outputs, mask = inputs
        output = outputs[-1]                                   # [B, T, H]
        B, T, H = output.shape
        x_flat = output.reshape(B * T, H)                      # glue reshape
        decoded = linear_decode(x_flat, self.weight_t, self.bias2d,
                                out_dtype=self.out_dtype)
        return (decoded, raw_outputs, outputs)


# ---------------------------------------------------------------------------
# Self-test
# ---------------------------------------------------------------------------
if __name__ == "__main__":
    key = jax.random.PRNGKey(0)
    k_param, k_raw, k_out, k_x, k_w, k_b = jax.random.split(key, 6)

    # --- module-level test at small spec-consistent shapes ------------------
    B, T, n_hid, n_out = 2, 8, 32, 64
    raw_outputs = [jax.random.normal(k_raw, (B, T, n_hid), dtype=jnp.float32)]
    outputs = [jax.random.normal(k_out, (B, T, n_hid), dtype=jnp.float32)]
    mask = jnp.ones((B, T), dtype=jnp.float32)

    model = LinearDecoderPallas(n_out=n_out, n_hid=n_hid, output_p=0.1,
                                bias=True, key=k_param)
    decoded, raw_ret, out_ret = model((raw_outputs, outputs, mask))
    decoded = jax.block_until_ready(decoded)
    assert decoded.shape == (B * T, n_out)
    assert decoded.dtype == jnp.float32

    x_flat = outputs[-1].reshape(B * T, n_hid)
    # bf16-consistent reference (same operand rounding as the kernel).
    ref_bf16 = jnp.dot(x_flat.astype(jnp.bfloat16), model.weight_t,
                       preferred_element_type=jnp.float32) + model.bias2d
    assert jnp.allclose(decoded, ref_bf16, atol=2e-3, rtol=2e-3)
    # f32 reference (module semantics), loose tolerance for bf16 operands.
    ref_f32 = x_flat @ model.weight.T + model.bias2d
    assert jnp.allclose(decoded, ref_f32, atol=3e-2, rtol=3e-2)

    # --- multi-tile / ragged-edge test (M and N not tile multiples) ---------
    M2, H2, N2 = 1050, 640, 1152
    x2 = jax.random.normal(k_x, (M2, H2), dtype=jnp.float32)
    w2 = jax.random.normal(k_w, (N2, H2), dtype=jnp.float32) * 0.05
    b2 = jax.random.normal(k_b, (1, N2), dtype=jnp.float32)
    w2_t = w2.T.astype(jnp.bfloat16)

    out2 = jax.block_until_ready(linear_decode(x2, w2_t, b2))
    assert out2.shape == (M2, N2)
    ref2 = jnp.dot(x2.astype(jnp.bfloat16), w2_t,
                   preferred_element_type=jnp.float32) + b2
    assert jnp.allclose(out2, ref2, atol=2e-2, rtol=2e-2)

    # --- bias=False path (no bias operand streamed) --------------------------
    out3 = jax.block_until_ready(linear_decode(x2, w2_t, None))
    ref3 = jnp.dot(x2.astype(jnp.bfloat16), w2_t, preferred_element_type=jnp.float32)
    assert jnp.allclose(out3, ref3, atol=2e-2, rtol=2e-2)

    print("KERNEL_OK")
</pallas_src>

<mosaic_0001>
module attributes {stable_mosaic.version = 11 : i64} {
  func.func @_decode_bias_kernel(%arg0: i32, %arg1: i32, %arg2: memref<16x32xf32, #tpu.memory_space<vmem>>, %arg3: memref<32x64xbf16, #tpu.memory_space<vmem>>, %arg4: memref<1x64xf32, #tpu.memory_space<vmem>>, %arg5: memref<16x64xf32, #tpu.memory_space<vmem>>) attributes {dimension_semantics = [#tpu.dimension_semantics<parallel>, #tpu.dimension_semantics<parallel>], iteration_bounds = array<i64: 1, 1>, scalar_prefetch = 0 : i64, scratch_operands = 0 : i64, tpu.core_type = #tpu.core_type<tc>, window_params = [{transform_indices = @transform_0, window_bounds = array<i64: 16, 32>}, {transform_indices = @transform_1, window_bounds = array<i64: 32, 64>}, {transform_indices = @transform_2, window_bounds = array<i64: 1, 64>}, {transform_indices = @transform_3, window_bounds = array<i64: 16, 64>}]} {
    %c0 = arith.constant 0 : index
    %c0_0 = arith.constant 0 : index
    %0 = vector.load %arg2[%c0, %c0_0] : memref<16x32xf32, #tpu.memory_space<vmem>>, vector<16x32xf32>
    %1 = arith.truncf %0 : vector<16x32xf32> to vector<16x32xbf16>
    %c0_1 = arith.constant 0 : index
    %c0_2 = arith.constant 0 : index
    %2 = vector.load %arg3[%c0_1, %c0_2] : memref<32x64xbf16, #tpu.memory_space<vmem>>, vector<32x64xbf16>
    %cst = arith.constant dense<0.000000e+00> : vector<16x64xf32>
    %3 = tpu.matmul %1, %2, %cst {dimension_numbers = #tpu.dot_dimension_numbers<[1], [0], [0], [1], [0, 0, 1, 1], [], []>} : vector<16x32xbf16>, vector<32x64xbf16>, vector<16x64xf32> -> vector<16x64xf32>
    %c0_3 = arith.constant 0 : index
    %c0_4 = arith.constant 0 : index
    %4 = vector.load %arg4[%c0_3, %c0_4] : memref<1x64xf32, #tpu.memory_space<vmem>>, vector<1x64xf32>
    %5 = vector.broadcast %4 : vector<1x64xf32> to vector<16x64xf32>
    %6 = arith.addf %3, %5 : vector<16x64xf32>
    %c0_5 = arith.constant 0 : index
    %c0_6 = arith.constant 0 : index
    %7 = vector.load %arg5[%c0_5, %c0_6] : memref<16x64xf32, #tpu.memory_space<vmem>>, vector<16x64xf32>
    tpu.vector_store %arg5[%c0_5, %c0_6], %6 {strides = array<i32>} : memref<16x64xf32, #tpu.memory_space<vmem>>, vector<16x64xf32>,
    return
  }
  func.func @transform_0(%arg0: i32, %arg1: i32) -> (i32, i32) {
    %c0_i32 = arith.constant 0 : i32
    %c0_i32_0 = arith.constant 0 : i32
    return %arg0, %c0_i32 : i32, i32
  }
  func.func @transform_1(%arg0: i32, %arg1: i32) -> (i32, i32) {
    %c0_i32 = arith.constant 0 : i32
    %c0_i32_0 = arith.constant 0 : i32
    return %c0_i32, %arg1 : i32, i32
  }
  func.func @transform_2(%arg0: i32, %arg1: i32) -> (i32, i32) {
    %c0_i32 = arith.constant 0 : i32
    %c0_i32_0 = arith.constant 0 : i32
    return %c0_i32, %arg1 : i32, i32
  }
  func.func @transform_3(%arg0: i32, %arg1: i32) -> (i32, i32) {
    %c0_i32 = arith.constant 0 : i32
    return %arg0, %arg1 : i32, i32
  }
}

</mosaic_0001>

<bundles_post_ra>
// kernel: linear_decode.1
= control target key start
LH: loop header
LB: loop body
LE: loop exit
PB: predicated region body
PF: predicated region fallthrough
CT: control target
= control target key end

     0   :  { %8 = vsyncpa [#allocation3], 0  ;;  %s254_s0 = inlined_call_operand.hbm [shape: f32[16,32], index: 0, kind: input, shape index: {}]   ;;  %s255_s1 = inlined_call_operand.hbm [shape: bf16[32,64], index: 1, kind: input, shape index: {}]   ;;  %s256_s2 = inlined_call_operand.vmem [shape: f32[1,64], index: 2, kind: input, shape index: {}]   ;;  %s257_s3 = inlined_call_operand.hbm [shape: f32[16,64], index: 3, kind: output, shape index: {}]  }
   0x1   :  { %9 = vsyncpa [#allocation6], 0 }
   0x2   :  { %10 = vsyncpa [#allocation4], 0  ;;  %s15_s14 = sshll.u32 %s254_s0, 4  ;;  %s209_s15 = smov [#allocation2]   ;;  %s16_s14 = int_to_ptr.hbm [resolvable:$true] %s15_s14 }
   0x3   :  { %s17_s16 = sshll.u32 %s209_s15, 4  ;;  %s28_s19 = sshll.u32 %s255_s1, 4  ;;  %s18_s16 = int_to_ptr.vmem [resolvable:$true] %s17_s16  ;;  %s29_s19 = int_to_ptr.hbm [resolvable:$true] %s28_s19 }
   0x4   :  { %s210_s20 = smov 128   ;;  %s211_s21 = smov 8  }
   0x5   :  { %23 = dma.hbm_to_vmem [thread:$0]  %s16_s14, 256, %s18_s16, [#allocation3], %s210_s20, %s210_s20, %s211_s21  }
   0x6   :  { %s212_s22 = smov [#allocation5]   ;;  %s213_s24 = smov 64  }
   0x7   :  { %s30_s23 = sshll.u32 %s212_s22, 4  ;;  %s214_s0 = smov 4   ;;  %s31_s23 = int_to_ptr.vmem [resolvable:$true] %s30_s23 }
   0x8   :  { %36 = dma.hbm_to_vmem [thread:$0]  %s29_s19, 256, %s31_s23, [#allocation6], %s213_s24, %s213_s24, %s214_s0  }
   0x9   :  { %203 = dma.done.wait [#allocation3], 256  }
   0xa   :  { %204 = vsyncadd [#allocation3], 4294967040 }
   0xb   :  { %205 = dma.done.wait [#allocation6], 256  }
   0xc   :  { %206 = vsyncadd [#allocation6], 4294967040  ;;  %v122_v0 = vld [vmem:[#allocation5 + $0x8] sm:$0xff]  ;;  %v121_v1 = vld [vmem:[#allocation5] sm:$0xff]  ;;  %vm71_vm0 = vcmask 261120   ;;  %vm89_vm1 = vcmask 523264  }
   0xd   :  { %81 = vmatpush.bf16.msra.mxu0 %v122_v0  ;;  %v48_v2 = vld [vmem:[#allocation2] sm:$0xff]  ;;  %v49_v3 = vld [vmem:[#allocation2 + $0x8] sm:$0xff]  ;;  %s215_s26 = smov [#allocation7]   ;;  %s98_s30 = sshll.u32 %s257_s3, 4  ;;  %s99_s30 = int_to_ptr.hbm [resolvable:$true] %s98_s30 }
   0xe   :  { %v50_v4 = vpack.c.bf16 %v49_v3, %v48_v2  ;;  %v130_v5 = vld [vmem:[%s256_s2] ss:$0 sm:$0xff]  ;;  %s96_s27 = sshll.u32 %s215_s26, 4  ;;  %s97_s27 = int_to_ptr.vmem [resolvable:$true] %s96_s27 }
  0x11   :  { %82 = vmatpush.bf16.msra.mxu0 %v121_v1 }
  0x14   :  { %120 = vmatmul.msk.bf16.vlgmr.msra.gmra.mxu0 %vm71_vm0, %v50_v4 }
  0x91   :  { %v84_v6 = vpop.f32.mrf.mxu0 }
  0x92   :  { %v85_v7 = vadd.f32 %v130_v5, %v84_v6 }
  0x94   :  { %90 = vst.msk [vmem:[#allocation7] sm:$0xff] %vm89_vm1, %v85_v7 }
  0x99   :  { %v86_v8 = vpop.f32.mrf.mxu0 }
  0x9a   :  { %v87_v9 = vadd.f32 %v130_v5, %v86_v8 }
  0x9c   :  { %91 = vst.msk [vmem:[#allocation7 + $0x8] sm:$0xff] %vm89_vm1, %v87_v9 }
  0x9d   :  { %104 = dma.vmem_to_hbm [thread:$0]  %s97_s27, 256, %s99_s30, [#allocation4], %s210_s20, %s210_s20, %s211_s21  }
  0x9e   :  { %207 = dma.done.wait [#allocation4], 256  }
  0x9f   :  { %208 = vsyncadd [#allocation4], 4294967040 }
  0xa0   :  { %109 = vsyncpa [#allocation3], 1 }
  0xa1   :  { %110 = vsyncpa [#allocation6], 1 }
  0xa2   :  { %111 = vsyncpa [#allocation4], 1 }

</bundles_post_ra>
